<compile_context>
chip_gen: v6e
topology: v6e:2x2x1
jax: 0.10.0
libtpu: 0.0.40
codegen_flags: <defaults>
</compile_context>

<pallas_src>
import jax
import jax.numpy as jnp
from jax.experimental import pallas as pl
from jax.experimental.pallas import tpu as pltpu


def _decoder_kernel(z_ref, w1_ref, b1_ref, w2_ref, b2_ref, o_ref):
    # z_ref : (TM, D_in)  f32 input tile (cast to bf16 in-kernel for the MXU)
    # w1_ref: (D_in, F)   bf16 pre.weight^T
    # b1_ref: (1, F)      f32  pre.bias
    # w2_ref: (1, F)      f32  proj.weight as a row
    # b2_ref: (1,)        f32  proj.bias (SMEM scalar)
    # o_ref : (TM, 1)     f32  output tile
    z = z_ref[...].astype(jnp.bfloat16)
    # pre: Linear on the MXU (bf16 x bf16 -> f32 accumulate) + bias + ReLU (VPU).
    h = jnp.dot(z, w1_ref[...], preferred_element_type=jnp.float32)
    h = jnp.maximum(h + b1_ref[...], 0.0)
    # TODO(synk): Dropout(0.5) is identity at inference time; training-mode
    # stochastic masking (pltpu.prng_seed / prng_random_bits) is omitted.
    # proj: single output channel -> VPU multiply + XLU lane reduce; fold the
    # scalar bias read from SMEM.
    out = jnp.sum(h * w2_ref[...], axis=-1, keepdims=True) + b2_ref[0]
    o_ref[...] = out.astype(o_ref.dtype)


def decoder_forward(z, w1, b1, w2, b2, *, tm=8192):
    """z: [..., D_in] float32. Returns [..., 1] float32.

    Weights are stored [in_dim, out_dim] (transposed vs. PyTorch nn.Linear).
    """
    lead_shape = z.shape[:-1]
    d_in = z.shape[-1]
    f = w1.shape[1]
    m = 1
    for s in lead_shape:
        m *= s

    z2 = z.reshape(m, d_in).astype(jnp.float32)

    # Row tile: multiple of 16 (bf16 sublane packing). Capped so
    #   - the streamed f32 input tile stays <= ~4 MiB (double-buffered),
    #   - the f32 hidden intermediate (TM, F) stays <= ~8 MiB,
    #   - tiny inputs do not pay a large padded tail.
    rows_by_in = (4 * 1024 * 1024) // max(1, d_in * 4)
    rows_by_h = (8 * 1024 * 1024) // max(1, f * 4)
    tm_eff = min(tm, max(256, rows_by_in), max(256, rows_by_h),
                 ((m + 15) // 16) * 16)
    tm_eff = max(16, (tm_eff // 16) * 16)

    grid = (pl.cdiv(m, tm_eff),)  # ragged final block is clipped by Pallas

    w1_bf = w1.astype(jnp.bfloat16)
    b1_2d = b1.reshape(1, f).astype(jnp.float32)
    w2_row = w2.reshape(1, f).astype(jnp.float32)
    b2_s = b2.reshape(1).astype(jnp.float32)

    out = pl.pallas_call(
        _decoder_kernel,
        out_shape=jax.ShapeDtypeStruct((m, 1), jnp.float32),
        grid_spec=pltpu.PrefetchScalarGridSpec(
            num_scalar_prefetch=0,
            grid=grid,
            in_specs=[
                pl.BlockSpec((tm_eff, d_in), lambda i: (i, 0)),       # z tile
                pl.BlockSpec((d_in, f), lambda i: (0, 0)),            # w1
                pl.BlockSpec((1, f), lambda i: (0, 0)),               # b1
                pl.BlockSpec((1, f), lambda i: (0, 0)),               # w2 row
                pl.BlockSpec(memory_space=pltpu.MemorySpace.SMEM),    # b2
            ],
            out_specs=pl.BlockSpec((tm_eff, 1), lambda i: (i, 0)),
        ),
        compiler_params=pltpu.CompilerParams(
            dimension_semantics=("parallel",),
            vmem_limit_bytes=32 * 1024 * 1024,
        ),
    )(z2, w1_bf, b1_2d, w2_row, b2_s)

    return out.reshape(*lead_shape, 1)


def init_decoder_params(key, hidden_dim, filter_channels, dtype=jnp.float32):
    """Deterministic init mimicking nn.Linear default (U[-1/sqrt(fan_in), +])."""
    d_in = hidden_dim * 4
    k1, k2, k3, k4 = jax.random.split(key, 4)
    bound1 = 1.0 / jnp.sqrt(d_in)
    bound2 = 1.0 / jnp.sqrt(filter_channels)
    w1 = jax.random.uniform(k1, (d_in, filter_channels), dtype, -bound1, bound1)
    b1 = jax.random.uniform(k2, (filter_channels,), dtype, -bound1, bound1)
    w2 = jax.random.uniform(k3, (filter_channels, 1), dtype, -bound2, bound2)
    b2 = jax.random.uniform(k4, (1,), dtype, -bound2, bound2)
    return w1, b1, w2, b2


if __name__ == "__main__":
    hidden_dim = 32          # -> input feature dim = hidden_dim * 4 = 128
    filter_channels = 128
    batch, seq = 2, 8        # z: [B, T, hidden_dim*4]

    key = jax.random.PRNGKey(0)
    kz, kp = jax.random.split(key)
    z = jax.random.normal(kz, (batch, seq, hidden_dim * 4), dtype=jnp.float32)
    w1, b1, w2, b2 = init_decoder_params(kp, hidden_dim, filter_channels)

    out = decoder_forward(z, w1, b1, w2, b2)
    out = jax.block_until_ready(out)

    # Reference check in plain JAX f32 (eval-mode dropout == identity).
    # Kernel casts to bf16 for the MXU with f32 accumulation -> loose tolerance.
    ref = jnp.maximum(z.reshape(-1, hidden_dim * 4) @ w1 + b1, 0.0) @ w2 + b2
    ref = ref.reshape(batch, seq, 1)
    assert out.shape == (batch, seq, 1)
    assert jnp.allclose(out, ref, atol=3e-2, rtol=3e-2)

    print("KERNEL_OK")
</pallas_src>

<mosaic_0001>
module attributes {stable_mosaic.version = 11 : i64} {
  func.func @_decoder_kernel(%arg0: i32, %arg1: memref<16x128xf32, #tpu.memory_space<vmem>>, %arg2: memref<128x128xbf16, #tpu.memory_space<vmem>>, %arg3: memref<1x128xf32, #tpu.memory_space<vmem>>, %arg4: memref<1x128xf32, #tpu.memory_space<vmem>>, %arg5: memref<1xf32, #tpu.memory_space<smem>>, %arg6: memref<16x1xf32, #tpu.memory_space<vmem>>) attributes {dimension_semantics = [#tpu.dimension_semantics<parallel>], iteration_bounds = array<i64: 1>, scalar_prefetch = 0 : i64, scratch_operands = 0 : i64, tpu.core_type = #tpu.core_type<tc>, window_params = [{transform_indices = @transform_0, window_bounds = array<i64: 16, 128>}, {pipeline_mode = #tpu.pipeline_mode<synchronous>, transform_indices = @transform_1, window_bounds = array<i64: 128, 128>}, {pipeline_mode = #tpu.pipeline_mode<synchronous>, transform_indices = @transform_2, window_bounds = array<i64: 1, 128>}, {pipeline_mode = #tpu.pipeline_mode<synchronous>, transform_indices = @transform_3, window_bounds = array<i64: 1, 128>}, {transform_indices = @transform_4, window_bounds = array<i64: 1>}, {transform_indices = @transform_5, window_bounds = array<i64: 16, 1>}]} {
    %c0 = arith.constant 0 : index
    %c0_0 = arith.constant 0 : index
    %0 = vector.load %arg1[%c0, %c0_0] : memref<16x128xf32, #tpu.memory_space<vmem>>, vector<16x128xf32>
    %1 = arith.truncf %0 : vector<16x128xf32> to vector<16x128xbf16>
    %c0_1 = arith.constant 0 : index
    %c0_2 = arith.constant 0 : index
    %2 = vector.load %arg2[%c0_1, %c0_2] : memref<128x128xbf16, #tpu.memory_space<vmem>>, vector<128x128xbf16>
    %cst = arith.constant dense<0.000000e+00> : vector<16x128xf32>
    %3 = tpu.matmul %1, %2, %cst {dimension_numbers = #tpu.dot_dimension_numbers<[1], [0], [0], [1], [0, 0, 1, 1], [], []>} : vector<16x128xbf16>, vector<128x128xbf16>, vector<16x128xf32> -> vector<16x128xf32>
    %c0_3 = arith.constant 0 : index
    %c0_4 = arith.constant 0 : index
    %4 = vector.load %arg3[%c0_3, %c0_4] : memref<1x128xf32, #tpu.memory_space<vmem>>, vector<1x128xf32>
    %5 = vector.broadcast %4 : vector<1x128xf32> to vector<16x128xf32>
    %6 = arith.addf %3, %5 : vector<16x128xf32>
    %cst_5 = arith.constant 0.000000e+00 : f32
    %7 = vector.broadcast %cst_5 : f32 to vector<16x128xf32>
    %8 = arith.maximumf %6, %7 : vector<16x128xf32>
    %c0_6 = arith.constant 0 : index
    %c0_7 = arith.constant 0 : index
    %9 = vector.load %arg4[%c0_6, %c0_7] : memref<1x128xf32, #tpu.memory_space<vmem>>, vector<1x128xf32>
    %10 = vector.broadcast %9 : vector<1x128xf32> to vector<16x128xf32>
    %11 = arith.mulf %8, %10 : vector<16x128xf32>
    %cst_8 = arith.constant dense<0.000000e+00> : vector<16xf32>
    %12 = vector.multi_reduction <add>, %11, %cst_8 [1] : vector<16x128xf32> to vector<16xf32>
    %13 = vector.shape_cast %12 : vector<16xf32> to vector<16x1xf32>
    %c0_9 = arith.constant 0 : index
    %14 = memref.load %arg5[%c0_9] : memref<1xf32, #tpu.memory_space<smem>>
    %15 = vector.broadcast %14 : f32 to vector<16x1xf32>
    %16 = arith.addf %13, %15 : vector<16x1xf32>
    %c0_10 = arith.constant 0 : index
    %c0_11 = arith.constant 0 : index
    %17 = vector.load %arg6[%c0_10, %c0_11] : memref<16x1xf32, #tpu.memory_space<vmem>>, vector<16x1xf32>
    tpu.vector_store %arg6[%c0_10, %c0_11], %16 {strides = array<i32>} : memref<16x1xf32, #tpu.memory_space<vmem>>, vector<16x1xf32>,
    return
  }
  func.func @transform_0(%arg0: i32) -> (i32, i32) {
    %c0_i32 = arith.constant 0 : i32
    %c0_i32_0 = arith.constant 0 : i32
    return %arg0, %c0_i32 : i32, i32
  }
  func.func @transform_1(%arg0: i32) -> (i32, i32) {
    %c0_i32 = arith.constant 0 : i32
    %c0_i32_0 = arith.constant 0 : i32
    %c0_i32_1 = arith.constant 0 : i32
    return %c0_i32, %c0_i32_0 : i32, i32
  }
  func.func @transform_2(%arg0: i32) -> (i32, i32) {
    %c0_i32 = arith.constant 0 : i32
    %c0_i32_0 = arith.constant 0 : i32
    %c0_i32_1 = arith.constant 0 : i32
    return %c0_i32, %c0_i32_0 : i32, i32
  }
  func.func @transform_3(%arg0: i32) -> (i32, i32) {
    %c0_i32 = arith.constant 0 : i32
    %c0_i32_0 = arith.constant 0 : i32
    %c0_i32_1 = arith.constant 0 : i32
    return %c0_i32, %c0_i32_0 : i32, i32
  }
  func.func @transform_4(%arg0: i32) -> i32 {
    %c0_i32 = arith.constant 0 : i32
    %c0_i32_0 = arith.constant 0 : i32
    return %c0_i32 : i32
  }
  func.func @transform_5(%arg0: i32) -> (i32, i32) {
    %c0_i32 = arith.constant 0 : i32
    %c0_i32_0 = arith.constant 0 : i32
    return %arg0, %c0_i32 : i32, i32
  }
}

</mosaic_0001>

<bundles_post_ra>
// kernel: tpu_custom_call.1
= control target key start
LH: loop header
LB: loop body
LE: loop exit
PB: predicated region body
PF: predicated region fallthrough
CT: control target
= control target key end

     0   :  { %11 = vsyncpa [#allocation4], 0  ;;  %s351_s0 = inlined_call_operand.hbm [shape: f32[16,128], index: 0, kind: input, shape index: {}]   ;;  %s352_s1 = inlined_call_operand.hbm [shape: bf16[128,128], index: 1, kind: input, shape index: {}]   ;;  %s353_s2 = inlined_call_operand.vmem [shape: f32[1,128], index: 2, kind: input, shape index: {}]   ;;  %s354_s3 = inlined_call_operand.vmem [shape: f32[1,128], index: 3, kind: input, shape index: {}]   ;;  %s355_s4 = inlined_call_operand.<no memory space> [shape: f32[1], index: 4, kind: input, shape index: {}]   ;;  %s356_s5 = inlined_call_operand.vmem [shape: f32[16,1], index: 5, kind: output, shape index: {}]  }
   0x1   :  { %12 = vsyncpa [#allocation6], 0  ;;  %s292_s18 = smov [#allocation3]  }
   0x2   :  { %s18_s19 = sshll.u32 %s292_s18, 4  ;;  %s19_s19 = int_to_ptr.vmem [resolvable:$true] %s18_s19 }
   0x3   :  { %s256_s20 = scalar_lea.vmem %s19_s19, 256  ;;  %p261_p1 = scmp.lt.s32.totalorder %s19_s19, %s19_s19 }
   0x4   :  { %p257_p0 = scmp.ne.s32.totalorder %s19_s19, %s256_s20  ;;  %p262_p2 = scmp.lt.s32.totalorder %s256_s20, %s256_s20 }
   0x6   :  { %p263_p3 = por %p262_p2, %p261_p1 }
   0x8   :  { %p264_p4 = pnand %p263_p3, %p257_p0 }
   0xa   :  { %267 = shalt.err (!%p264_p4)
}
   0xb   :  { %s293_s21 = smov 128   ;;  %s294_s22 = smov 8  }
   0xc   :  { %24 = dma.hbm_to_vmem [thread:$0]  %s351_s0, 256, %s19_s19, [#allocation4], %s293_s21, %s293_s21, %s294_s22  }
   0xd   :  { %s295_s25 = smov [#allocation5]  }
   0xe   :  { %s30_s26 = sshll.u32 %s295_s25, 4  ;;  %s31_s26 = int_to_ptr.vmem [resolvable:$true] %s30_s26 }
   0xf   :  { %s276_s27 = scalar_lea.vmem %s31_s26, 1024  ;;  %p281_p6 = scmp.lt.s32.totalorder %s31_s26, %s31_s26 }
  0x10   :  { %p277_p5 = scmp.ne.s32.totalorder %s31_s26, %s276_s27  ;;  %p282_p7 = scmp.lt.s32.totalorder %s276_s27, %s276_s27 }
  0x12   :  { %p283_p8 = por %p282_p7, %p281_p6 }
  0x14   :  { %p284_p9 = pnand %p283_p8, %p277_p5 }
  0x16   :  { %287 = shalt.err (!%p284_p9)
}
  0x17   :  { %s296_s28 = smov 64   ;;  %s297_s29 = smov 4  }
  0x18   :  { %36 = dma.hbm_to_vmem [thread:$0]  %s352_s1, 1024, %s31_s26, [#allocation6], %s296_s28, %s296_s28, %s297_s29  }
  0x19   :  { %288 = dma.done.wait [#allocation4], 256  }
  0x1a   :  { %289 = vsyncadd [#allocation4], 4294967040 }
  0x1b   :  { %290 = dma.done.wait [#allocation6], 1024  }
  0x1c   :  { %291 = vsyncadd [#allocation6], 4294966272  ;;  %v298_v0 = vmov 0.0   ;;  %vm299_vm0 = vmmov 0   ;;  %v240_v1 = vld [vmem:[#allocation5 + $0x38] sm:$0xff]   ;;  %v241_v2 = vld [vmem:[#allocation5 + $0x30] sm:$0xff]   ;;  %v181_v24 = vstv %s355_s4 }
  0x1d   :  { %212 = vmatprep.subr.bf16.mxu0 %v298_v0  ;;  %228 = vmatprep.mubr.msk.bf16.mxu0 %vm299_vm0, %v298_v0  ;;  %v242_v3 = vld [vmem:[#allocation5 + $0x28] sm:$0xff]   ;;  %v243_v4 = vld [vmem:[#allocation5 + $0x20] sm:$0xff]   ;;  %v244_v5 = vld [vmem:[#allocation5 + $0x18] sm:$0xff]   ;;  %vm184_vm1 = vcmask 7168  }
  0x1e   :  { %213 = vmatpush3.bf16.msra.mxu0 %v240_v1  ;;  %v245_v6 = vld [vmem:[#allocation5 + $0x10] sm:$0xff]   ;;  %v246_v7 = vld [vmem:[#allocation5 + $0x8] sm:$0xff]   ;;  %v247_v8 = vld [vmem:[#allocation5] sm:$0xff]  }
  0x1f   :  { %214 = vmatprep.subr.bf16.mxu0 %v298_v0  ;;  %v50_v9 = vld [vmem:[#allocation3] sm:$0xff]  ;;  %v51_v10 = vld [vmem:[#allocation3 + $0x8] sm:$0xff] }
  0x20   :  { %v52_v11 = vpack.c.bf16 %v51_v10, %v50_v9  ;;  %v193_v12 = vld [vmem:[%s353_s2] ss:$0 sm:$0xff] }
  0x21   :  { %v202_v16 = vld [vmem:[%s354_s3] ss:$0 sm:$0xff] }
  0x22   :  { %215 = vmatpush3.bf16.msra.mxu0 %v241_v2 }
  0x23   :  { %216 = vmatprep.subr.bf16.mxu0 %v298_v0 }
  0x26   :  { %217 = vmatpush3.bf16.msra.mxu0 %v242_v3 }
  0x27   :  { %218 = vmatprep.subr.bf16.mxu0 %v298_v0 }
  0x2a   :  { %219 = vmatpush3.bf16.msra.mxu0 %v243_v4 }
  0x2b   :  { %220 = vmatprep.subr.bf16.mxu0 %v298_v0 }
  0x2e   :  { %221 = vmatpush3.bf16.msra.mxu0 %v244_v5 }
  0x2f   :  { %222 = vmatprep.subr.bf16.mxu0 %v298_v0 }
  0x32   :  { %223 = vmatpush3.bf16.msra.mxu0 %v245_v6 }
  0x33   :  { %224 = vmatprep.subr.bf16.mxu0 %v298_v0 }
  0x36   :  { %225 = vmatpush3.bf16.msra.mxu0 %v246_v7 }
  0x37   :  { %226 = vmatprep.subr.bf16.mxu0 %v298_v0 }
  0x3a   :  { %227 = vmatpush3.bf16.msra.mxu0 %v247_v8 }
  0x3d   :  { %229 = vmatmul.mubr.bf16.vlgmr.msra.gmra.mxu0 %v52_v11 }
  0xfd   :  { %v158_v13 = vpop.f32.mrf.mxu0 }
  0xfe   :  { %v159_v14 = vadd.f32 %v193_v12, %v158_v13 }
  0xff   :  { %v230_v15 = vpop.f32.mrf.mxu0 }
 0x100   :  { %v165_v17 = vmax.f32 %v159_v14, 0.0 }
 0x101   :  { %v161_v18 = vpop.f32.mrf.mxu0 }
 0x102   :  { %v162_v19 = vadd.f32 %v193_v12, %v161_v18  ;;  %v174_v20 = vmul.f32 %v202_v16, %v165_v17 }
 0x103   :  { %v231_v21 = vpop.f32.mrf.mxu0 }
 0x104   :  { %v166_v22 = vmax.f32 %v162_v19, 0.0  ;;  %176 = vadd.xlane.f32.xlu0 %v174_v20 }
 0x106   :  { %v175_v23 = vmul.f32 %v202_v16, %v166_v22 }
 0x108   :  { %178 = vadd.xlane.f32.xlu0 %v175_v23 }
 0x18d   :  { %v177_v25 = vpop.xlane.xlu0 %176 }
 0x18e   :  { %v182_v26 = vadd.f32 %v181_v24, %v177_v25 }
 0x190   :  { %185 = vst.msk [vmem:[%s356_s5] sm:$0xff] %vm184_vm1, %v182_v26 }
 0x191   :  { %v179_v27 = vpop.xlane.xlu0 %178 }
 0x192   :  { %v183_v28 = vadd.f32 %v181_v24, %v179_v27 }
 0x194   :  { %186 = vst.msk [vmem:[%s356_s5 + $0x8] sm:$0xff] %vm184_vm1, %v183_v28 }
 0x195   :  { %191 = vsyncpa [#allocation4], 1 }
 0x196   :  { %192 = vsyncpa [#allocation6], 1 }

</bundles_post_ra>
